<compile_context>
chip_gen: v7x
topology: tpu7x:2x2x1
jax: 0.10.0
libtpu: 0.0.40
codegen_flags: <defaults>
</compile_context>

<pallas_src>
import functools

import jax
import jax.numpy as jnp
from jax.experimental import pallas as pl
from jax.experimental.pallas import tpu as pltpu


def actor_kernel(x_ref, w1_ref, b1_ref, a1_ref,
                 w2_ref, b2_ref, a2_ref,
                 w3_ref, b3_ref, o_ref):
    """Fused 3-layer MLP with PReLU activations.

    Matmuls take bf16 operands and accumulate in f32 on the MXU; bias-add and
    PReLU run in f32 on the VPU. PReLU alphas are scalars read from SMEM.
    The output tile is lane-dense (last dim padded to 128 by the wrapper).

    Note: when B is not a multiple of block_b the padded tail rows compute on
    unspecified data; this is harmless because there is no cross-row reduction
    and out-of-range writes are dropped. Do NOT add a batch reduction here
    without masking the tail.
    """
    x = x_ref[...]                      # (block_b, in_dim) bf16
    a1 = a1_ref[0]                      # f32 scalar from SMEM
    a2 = a2_ref[0]

    # Layer 1: Linear + (Dropout = identity in eval) + PReLU
    h1 = jnp.dot(x, w1_ref[...], preferred_element_type=jnp.float32) + b1_ref[...]
    h1 = jnp.where(h1 > 0, h1, a1 * h1)

    # Layer 2: Linear + (Dropout = identity in eval) + PReLU
    h2 = jnp.dot(h1.astype(jnp.bfloat16), w2_ref[...],
                 preferred_element_type=jnp.float32) + b2_ref[...]
    h2 = jnp.where(h2 > 0, h2, a2 * h2)

    # Layer 3: Linear (logits, no softmax — matches the module)
    out = jnp.dot(h2.astype(jnp.bfloat16), w3_ref[...],
                  preferred_element_type=jnp.float32) + b3_ref[...]
    o_ref[...] = out.astype(o_ref.dtype)


@functools.partial(jax.jit, static_argnames=("block_b",))
def actor_forward(x, params, block_b=None):
    w1, b1, a1, w2, b2, a2, w3, b3 = params
    B, in_dim = x.shape
    hidden = w1.shape[1]
    out_dim = w3.shape[1]

    # Default: one grid step (block_b = B).  v5e/v6e have a single TC, so
    # extra grid steps only add pipeline overhead for this sub-us kernel.
    # On v7x with large B, sweep block_b in {B, B//2} to engage both TCs.
    if block_b is None:
        block_b = B
    block_b = min(block_b, B)
    grid = (pl.cdiv(B, block_b),)

    # Lane-dense output: pad the final-layer N dimension up to a multiple of
    # 128 so stores are unmasked full-lane vst; slice back after the call.
    out_pad = ((out_dim + 127) // 128) * 128
    w3p = jnp.pad(w3, ((0, 0), (0, out_pad - out_dim)))
    b3p = jnp.pad(b3, ((0, 0), (0, out_pad - out_dim)))

    # Constant-index parameter blocks: replicate the full array to every grid
    # step and single-buffer them (they never change across steps).
    def const_spec(shape):
        return pl.BlockSpec(shape, lambda i: (0, 0),
                            pipeline_mode=pl.Buffered(1))

    # PReLU alphas are 4-byte scalars: keep them in SMEM, not VMEM tiles.
    smem_spec = pl.BlockSpec(memory_space=pltpu.MemorySpace.SMEM)

    # Advisory cost so XLA schedules/overlaps this tiny custom call tightly.
    flops = 2 * B * (in_dim * hidden + hidden * hidden + hidden * out_pad)
    bytes_accessed = (B * in_dim * 2                                   # x (bf16)
                      + (in_dim * hidden + hidden * hidden
                         + hidden * out_pad) * 2                       # weights (bf16)
                      + (hidden + hidden + out_pad + 2) * 4            # biases + alphas (f32)
                      + B * out_pad * 4)                               # output (f32)
    cost = pl.CostEstimate(flops=flops, transcendentals=0,
                           bytes_accessed=bytes_accessed)

    out = pl.pallas_call(
        actor_kernel,
        out_shape=jax.ShapeDtypeStruct((B, out_pad), jnp.float32),
        grid=grid,
        in_specs=[
            pl.BlockSpec((block_b, in_dim), lambda i: (i, 0)),   # x tile
            const_spec((in_dim, hidden)),                        # w1 (bf16)
            const_spec((1, hidden)),                             # b1 (f32)
            smem_spec,                                           # alpha1
            const_spec((hidden, hidden)),                        # w2 (bf16)
            const_spec((1, hidden)),                             # b2 (f32)
            smem_spec,                                           # alpha2
            const_spec((hidden, out_pad)),                       # w3 padded (bf16)
            const_spec((1, out_pad)),                            # b3 padded (f32)
        ],
        out_specs=pl.BlockSpec((block_b, out_pad), lambda i: (i, 0)),
        compiler_params=pltpu.CompilerParams(
            dimension_semantics=("parallel",)),
        cost_estimate=cost,
    )(x, w1, b1, a1, w2, b2, a2, w3p, b3p)

    return out[:, :out_dim]


def init_actor_params(key, input_size, hidden_size, output_size):
    """Deterministic init mimicking PyTorch nn.Linear / nn.PReLU defaults.

    Weights are stored (in, out) in bf16 (MXU operands); biases and PReLU
    alphas stay f32 (added / applied after the f32-accumulated matmul).
    """
    def linear_init(k, fan_in, fan_out):
        kw, kb = jax.random.split(k)
        bound = 1.0 / float(fan_in) ** 0.5
        w = jax.random.uniform(kw, (fan_in, fan_out), jnp.float32,
                               minval=-bound, maxval=bound).astype(jnp.bfloat16)
        b = jax.random.uniform(kb, (1, fan_out), jnp.float32,
                               minval=-bound, maxval=bound)
        return w, b

    k1, k2, k3 = jax.random.split(key, 3)
    w1, b1 = linear_init(k1, input_size, hidden_size)
    w2, b2 = linear_init(k2, hidden_size, hidden_size)
    w3, b3 = linear_init(k3, hidden_size, output_size)
    a1 = jnp.full((1,), 0.25, jnp.float32)   # PReLU default
    a2 = jnp.full((1,), 0.25, jnp.float32)
    return (w1, b1, a1, w2, b2, a2, w3, b3)


def actor_reference(x, params):
    """Pure-JAX reference (eval-mode dropout = identity), same mixed precision."""
    w1, b1, a1, w2, b2, a2, w3, b3 = params
    h = jnp.dot(x, w1, preferred_element_type=jnp.float32) + b1
    h = jnp.where(h > 0, h, a1[0] * h)
    h = jnp.dot(h.astype(jnp.bfloat16), w2,
                preferred_element_type=jnp.float32) + b2
    h = jnp.where(h > 0, h, a2[0] * h)
    return jnp.dot(h.astype(jnp.bfloat16), w3,
                   preferred_element_type=jnp.float32) + b3


if __name__ == "__main__":
    # Small model dims (32-wide MLP, 8 actions).  Default tiling is a single
    # grid step (block_b = B), which is optimal on single-TC v5e/v6e.
    batch, input_size, hidden_size, output_size = 256, 32, 32, 8

    key = jax.random.PRNGKey(0)
    kx, kp = jax.random.split(key)
    x = jax.random.normal(kx, (batch, input_size), jnp.float32).astype(jnp.bfloat16)
    params = init_actor_params(kp, input_size, hidden_size, output_size)

    out = actor_forward(x, params)
    out = jax.block_until_ready(out)

    ref = actor_reference(x, params)
    assert out.shape == (batch, output_size), out.shape
    assert jnp.allclose(out, ref, atol=1e-3, rtol=1e-3), (
        float(jnp.max(jnp.abs(out - ref))))

    print("KERNEL_OK")
</pallas_src>

<mosaic_0001>
module attributes {stable_mosaic.version = 11 : i64} {
  func.func @actor_kernel(%arg0: i32, %arg1: memref<256x32xbf16, #tpu.memory_space<vmem>>, %arg2: memref<32x32xbf16, #tpu.memory_space<vmem>>, %arg3: memref<1x32xf32, #tpu.memory_space<vmem>>, %arg4: memref<1xf32, #tpu.memory_space<smem>>, %arg5: memref<32x32xbf16, #tpu.memory_space<vmem>>, %arg6: memref<1x32xf32, #tpu.memory_space<vmem>>, %arg7: memref<1xf32, #tpu.memory_space<smem>>, %arg8: memref<32x128xbf16, #tpu.memory_space<vmem>>, %arg9: memref<1x128xf32, #tpu.memory_space<vmem>>, %arg10: memref<256x128xf32, #tpu.memory_space<vmem>>) attributes {dimension_semantics = [#tpu.dimension_semantics<parallel>], iteration_bounds = array<i64: 1>, scalar_prefetch = 0 : i64, scratch_operands = 0 : i64, tpu.core_type = #tpu.core_type<tc>, window_params = [{transform_indices = @transform_0, window_bounds = array<i64: 256, 32>}, {pipeline_mode = #tpu.pipeline_mode<synchronous>, transform_indices = @transform_1, window_bounds = array<i64: 32, 32>}, {pipeline_mode = #tpu.pipeline_mode<synchronous>, transform_indices = @transform_2, window_bounds = array<i64: 1, 32>}, {transform_indices = @transform_3, window_bounds = array<i64: 1>}, {pipeline_mode = #tpu.pipeline_mode<synchronous>, transform_indices = @transform_4, window_bounds = array<i64: 32, 32>}, {pipeline_mode = #tpu.pipeline_mode<synchronous>, transform_indices = @transform_5, window_bounds = array<i64: 1, 32>}, {transform_indices = @transform_6, window_bounds = array<i64: 1>}, {pipeline_mode = #tpu.pipeline_mode<synchronous>, transform_indices = @transform_7, window_bounds = array<i64: 32, 128>}, {pipeline_mode = #tpu.pipeline_mode<synchronous>, transform_indices = @transform_8, window_bounds = array<i64: 1, 128>}, {transform_indices = @transform_9, window_bounds = array<i64: 256, 128>}]} {
    %c0 = arith.constant 0 : index
    %c0_0 = arith.constant 0 : index
    %0 = vector.load %arg1[%c0, %c0_0] : memref<256x32xbf16, #tpu.memory_space<vmem>>, vector<256x32xbf16>
    %c0_1 = arith.constant 0 : index
    %1 = memref.load %arg4[%c0_1] : memref<1xf32, #tpu.memory_space<smem>>
    %c0_2 = arith.constant 0 : index
    %2 = memref.load %arg7[%c0_2] : memref<1xf32, #tpu.memory_space<smem>>
    %c0_3 = arith.constant 0 : index
    %c0_4 = arith.constant 0 : index
    %3 = vector.load %arg2[%c0_3, %c0_4] : memref<32x32xbf16, #tpu.memory_space<vmem>>, vector<32x32xbf16>
    %cst = arith.constant dense<0.000000e+00> : vector<256x32xf32>
    %4 = tpu.matmul %0, %3, %cst {dimension_numbers = #tpu.dot_dimension_numbers<[1], [0], [0], [1], [0, 0, 1, 1], [], []>} : vector<256x32xbf16>, vector<32x32xbf16>, vector<256x32xf32> -> vector<256x32xf32>
    %c0_5 = arith.constant 0 : index
    %c0_6 = arith.constant 0 : index
    %5 = vector.load %arg3[%c0_5, %c0_6] : memref<1x32xf32, #tpu.memory_space<vmem>>, vector<1x32xf32>
    %6 = vector.broadcast %5 : vector<1x32xf32> to vector<256x32xf32>
    %7 = arith.addf %4, %6 : vector<256x32xf32>
    %cst_7 = arith.constant 0.000000e+00 : f32
    %8 = vector.broadcast %cst_7 : f32 to vector<256x32xf32>
    %9 = arith.cmpf ogt, %7, %8 : vector<256x32xf32>
    %10 = vector.broadcast %1 : f32 to vector<256x32xf32>
    %11 = arith.mulf %10, %7 : vector<256x32xf32>
    %12 = arith.select %9, %7, %11 : vector<256x32xi1>, vector<256x32xf32>
    %13 = arith.truncf %12 : vector<256x32xf32> to vector<256x32xbf16>
    %c0_8 = arith.constant 0 : index
    %c0_9 = arith.constant 0 : index
    %14 = vector.load %arg5[%c0_8, %c0_9] : memref<32x32xbf16, #tpu.memory_space<vmem>>, vector<32x32xbf16>
    %cst_10 = arith.constant dense<0.000000e+00> : vector<256x32xf32>
    %15 = tpu.matmul %13, %14, %cst_10 {dimension_numbers = #tpu.dot_dimension_numbers<[1], [0], [0], [1], [0, 0, 1, 1], [], []>} : vector<256x32xbf16>, vector<32x32xbf16>, vector<256x32xf32> -> vector<256x32xf32>
    %c0_11 = arith.constant 0 : index
    %c0_12 = arith.constant 0 : index
    %16 = vector.load %arg6[%c0_11, %c0_12] : memref<1x32xf32, #tpu.memory_space<vmem>>, vector<1x32xf32>
    %17 = vector.broadcast %16 : vector<1x32xf32> to vector<256x32xf32>
    %18 = arith.addf %15, %17 : vector<256x32xf32>
    %cst_13 = arith.constant 0.000000e+00 : f32
    %19 = vector.broadcast %cst_13 : f32 to vector<256x32xf32>
    %20 = arith.cmpf ogt, %18, %19 : vector<256x32xf32>
    %21 = vector.broadcast %2 : f32 to vector<256x32xf32>
    %22 = arith.mulf %21, %18 : vector<256x32xf32>
    %23 = arith.select %20, %18, %22 : vector<256x32xi1>, vector<256x32xf32>
    %24 = arith.truncf %23 : vector<256x32xf32> to vector<256x32xbf16>
    %c0_14 = arith.constant 0 : index
    %c0_15 = arith.constant 0 : index
    %25 = vector.load %arg8[%c0_14, %c0_15] : memref<32x128xbf16, #tpu.memory_space<vmem>>, vector<32x128xbf16>
    %cst_16 = arith.constant dense<0.000000e+00> : vector<256x128xf32>
    %26 = tpu.matmul %24, %25, %cst_16 {dimension_numbers = #tpu.dot_dimension_numbers<[1], [0], [0], [1], [0, 0, 1, 1], [], []>} : vector<256x32xbf16>, vector<32x128xbf16>, vector<256x128xf32> -> vector<256x128xf32>
    %c0_17 = arith.constant 0 : index
    %c0_18 = arith.constant 0 : index
    %27 = vector.load %arg9[%c0_17, %c0_18] : memref<1x128xf32, #tpu.memory_space<vmem>>, vector<1x128xf32>
    %28 = vector.broadcast %27 : vector<1x128xf32> to vector<256x128xf32>
    %29 = arith.addf %26, %28 : vector<256x128xf32>
    %c0_19 = arith.constant 0 : index
    %c0_20 = arith.constant 0 : index
    %30 = vector.load %arg10[%c0_19, %c0_20] : memref<256x128xf32, #tpu.memory_space<vmem>>, vector<256x128xf32>
    tpu.vector_store %arg10[%c0_19, %c0_20], %29 {strides = array<i32>} : memref<256x128xf32, #tpu.memory_space<vmem>>, vector<256x128xf32>,
    return
  }
  func.func @transform_0(%arg0: i32) -> (i32, i32) {
    %c0_i32 = arith.constant 0 : i32
    %c0_i32_0 = arith.constant 0 : i32
    return %arg0, %c0_i32 : i32, i32
  }
  func.func @transform_1(%arg0: i32) -> (i32, i32) {
    %c0_i32 = arith.constant 0 : i32
    %c0_i32_0 = arith.constant 0 : i32
    %c0_i32_1 = arith.constant 0 : i32
    return %c0_i32, %c0_i32_0 : i32, i32
  }
  func.func @transform_2(%arg0: i32) -> (i32, i32) {
    %c0_i32 = arith.constant 0 : i32
    %c0_i32_0 = arith.constant 0 : i32
    %c0_i32_1 = arith.constant 0 : i32
    return %c0_i32, %c0_i32_0 : i32, i32
  }
  func.func @transform_3(%arg0: i32) -> i32 {
    %c0_i32 = arith.constant 0 : i32
    %c0_i32_0 = arith.constant 0 : i32
    return %c0_i32 : i32
  }
  func.func @transform_4(%arg0: i32) -> (i32, i32) {
    %c0_i32 = arith.constant 0 : i32
    %c0_i32_0 = arith.constant 0 : i32
    %c0_i32_1 = arith.constant 0 : i32
    return %c0_i32, %c0_i32_0 : i32, i32
  }
  func.func @transform_5(%arg0: i32) -> (i32, i32) {
    %c0_i32 = arith.constant 0 : i32
    %c0_i32_0 = arith.constant 0 : i32
    %c0_i32_1 = arith.constant 0 : i32
    return %c0_i32, %c0_i32_0 : i32, i32
  }
  func.func @transform_6(%arg0: i32) -> i32 {
    %c0_i32 = arith.constant 0 : i32
    %c0_i32_0 = arith.constant 0 : i32
    return %c0_i32 : i32
  }
  func.func @transform_7(%arg0: i32) -> (i32, i32) {
    %c0_i32 = arith.constant 0 : i32
    %c0_i32_0 = arith.constant 0 : i32
    %c0_i32_1 = arith.constant 0 : i32
    return %c0_i32, %c0_i32_0 : i32, i32
  }
  func.func @transform_8(%arg0: i32) -> (i32, i32) {
    %c0_i32 = arith.constant 0 : i32
    %c0_i32_0 = arith.constant 0 : i32
    %c0_i32_1 = arith.constant 0 : i32
    return %c0_i32, %c0_i32_0 : i32, i32
  }
  func.func @transform_9(%arg0: i32) -> (i32, i32) {
    %c0_i32 = arith.constant 0 : i32
    %c0_i32_0 = arith.constant 0 : i32
    return %arg0, %c0_i32 : i32, i32
  }
}

</mosaic_0001>

<bundles_post_ra>
// kernel: actor_forward.1
= control target key start
LH: loop header
LB: loop body
LE: loop exit
PB: predicated region body
PF: predicated region fallthrough
CT: control target
= control target key end

     0   :  { %vm172_vm0 = vcmask 261120   ;;  %s1851_s1 = inlined_call_operand.vmem [shape: bf16[32,32], index: 1, kind: input, shape index: {}]   ;;  %s1852_s0 = inlined_call_operand.vmem [shape: bf16[256,32], index: 0, kind: input, shape index: {}]   ;;  %s1853_s4 = inlined_call_operand.vmem [shape: bf16[32,32], index: 4, kind: input, shape index: {}]   ;;  %s1854_s7 = inlined_call_operand.vmem [shape: bf16[32,128], index: 7, kind: input, shape index: {}]   ;;  %s1855_s2 = inlined_call_operand.vmem [shape: f32[1,32], index: 2, kind: input, shape index: {}]   ;;  %s1856_s3 = inlined_call_operand.<no memory space> [shape: f32[1], index: 3, kind: input, shape index: {}]   ;;  %s1857_s5 = inlined_call_operand.vmem [shape: f32[1,32], index: 5, kind: input, shape index: {}]   ;;  %s1858_s6 = inlined_call_operand.<no memory space> [shape: f32[1], index: 6, kind: input, shape index: {}]   ;;  %s1859_s8 = inlined_call_operand.vmem [shape: f32[1,128], index: 8, kind: input, shape index: {}]   ;;  %s1860_s9 = inlined_call_operand.vmem [shape: f32[256,128], index: 9, kind: output, shape index: {}]  }
   0x1   :  { %v1347_v0 = vld [vmem:[%s1851_s1] sm:$0xff]   ;;  %v1348_v1 = vld [vmem:[%s1851_s1 + $0x8] sm:$0xff]   ;;  %v1351_v4 = vld [vmem:[%s1852_s0 + $0x10] sm:$0xff]   ;;  %v1509_v24 = vstv %s1856_s3 }
   0x2   :  { %1235 = vmatprep.subr.bf16.mxu0 %v1347_v0  ;;  %v1349_v2 = vld [vmem:[%s1852_s0] sm:$0xff]   ;;  %1343 = vmatprep.subr.bf16.mxu1 %v1347_v0  ;;  %v1350_v3 = vld [vmem:[%s1852_s0 + $0x8] sm:$0xff]   ;;  %v1359_v7 = vld [vmem:[%s1852_s0 + $0x50] sm:$0xff]  }
   0x3   :  { %1236 = vmatpush3.bf16.msra.mxu0 %v1347_v0  ;;  %1345 = vmatpush3.bf16.msra.mxu1 %v1347_v0  ;;  %v1357_v5 = vld [vmem:[%s1852_s0 + $0x40] sm:$0xff]   ;;  %v1358_v6 = vld [vmem:[%s1852_s0 + $0x48] sm:$0xff]   ;;  %v1352_v8 = vld [vmem:[%s1852_s0 + $0x18] sm:$0xff]  }
   0x4   :  { %1237 = vmatprep.subr.bf16.mxu0 %v1348_v1  ;;  %1239 = vmatprep.mubr.msk.bf16.mxu0 %vm172_vm0, %v1349_v2  ;;  %v1353_v9 = vld [vmem:[%s1852_s0 + $0x20] sm:$0xff]   ;;  %v1360_v10 = vld [vmem:[%s1852_s0 + $0x58] sm:$0xff]   ;;  %v1366_v13 = vld [vmem:[%s1853_s4 + $0x8] sm:$0xff]  }
   0x5   :  { %1344 = vmatprep.subr.bf16.mxu1 %v1348_v1  ;;  %1255 = vmatprep.mubr.msk.bf16.mxu1 %vm172_vm0, %v1357_v5  ;;  %v1361_v11 = vld [vmem:[%s1852_s0 + $0x60] sm:$0xff]   ;;  %v1354_v14 = vld [vmem:[%s1852_s0 + $0x28] sm:$0xff]   ;;  %v1355_v15 = vld [vmem:[%s1852_s0 + $0x30] sm:$0xff]  }
   0x6   :  { %v1365_v12 = vld [vmem:[%s1853_s4] sm:$0xff]   ;;  %v1362_v16 = vld [vmem:[%s1852_s0 + $0x68] sm:$0xff]   ;;  %v1363_v17 = vld [vmem:[%s1852_s0 + $0x70] sm:$0xff]  }
   0x7   :  { %1238 = vmatpush3.bf16.msra.mxu0 %v1348_v1  ;;  %1346 = vmatpush3.bf16.msra.mxu1 %v1348_v1  ;;  %v1356_v18 = vld [vmem:[%s1852_s0 + $0x38] sm:$0xff]   ;;  %v1367_v20 = vld [vmem:[%s1854_s7] sm:$0xff]   ;;  %v1368_v21 = vld [vmem:[%s1854_s7 + $0x8] sm:$0xff]  }
   0x8   :  { %1271 = vmatprep.subr.bf16.mxu1 %v1365_v12  ;;  %v1364_v19 = vld [vmem:[%s1852_s0 + $0x78] sm:$0xff]   ;;  %1307 = vmatprep.subr.bf16.mxu0 %v1367_v20  ;;  %v1504_v22 = vld [vmem:[%s1855_s2] ss:$0 sm:$0xff] }
   0xa   :  { %1240 = vmatmul.mubr.msk.bf16.vlgmr.msra.gmra.mrb[0].mxu0 %vm172_vm0, %v1350_v3  ;;  %1256 = vmatmul.mubr.msk.bf16.vlgmr.msra.gmra.mrb[0].mxu1 %vm172_vm0, %v1358_v6 }
   0xb   :  { %1243 = vmatprep.mubr.msk.bf16.mxu0 %vm172_vm0, %v1351_v4  ;;  %1259 = vmatprep.mubr.msk.bf16.mxu1 %vm172_vm0, %v1359_v7 }
   0xc   :  { %1272 = vmatpush3.bf16.msra.mxu1 %v1365_v12  ;;  %1308 = vmatpush3.bf16.msra.mxu0 %v1367_v20 }
   0xd   :  { %1273 = vmatprep.subr.bf16.mxu1 %v1366_v13  ;;  %1309 = vmatprep.subr.bf16.mxu0 %v1368_v21 }
  0x10   :  { %1274 = vmatpush3.bf16.msra.mxu1 %v1366_v13  ;;  %1310 = vmatpush3.bf16.msra.mxu0 %v1368_v21 }
  0x12   :  { %1244 = vmatmul.mubr.msk.bf16.gmra.mrb[4].mxu0 %vm172_vm0, %v1352_v8  ;;  %1260 = vmatmul.mubr.msk.bf16.gmra.mrb[4].mxu1 %vm172_vm0, %v1360_v10 }
  0x13   :  { %1247 = vmatprep.mubr.msk.bf16.mxu0 %vm172_vm0, %v1353_v9  ;;  %1263 = vmatprep.mubr.msk.bf16.mxu1 %vm172_vm0, %v1361_v11 }
  0x1a   :  { %1248 = vmatmul.mubr.msk.bf16.gmra.mrb[8].mxu0 %vm172_vm0, %v1354_v14  ;;  %1264 = vmatmul.mubr.msk.bf16.gmra.mrb[8].mxu1 %vm172_vm0, %v1362_v16 }
  0x1b   :  { %1251 = vmatprep.mubr.msk.bf16.mxu0 %vm172_vm0, %v1355_v15  ;;  %1267 = vmatprep.mubr.msk.bf16.mxu1 %vm172_vm0, %v1363_v17 }
  0x22   :  { %1252 = vmatmul.mubr.msk.bf16.gmra.mrb[12].mxu0 %vm172_vm0, %v1356_v18  ;;  %1268 = vmatmul.mubr.msk.bf16.gmra.mrb[12].mxu1 %vm172_vm0, %v1364_v19 }
  0xdd   :  { %v1241_v23 = vpop.f32.mrb[0].mxu0  ;;  %v1257_v32 = vpop.f32.mrb[0].mxu1 }
  0xde   :  { %v264_v25 = vadd.f32 %v1241_v23, %v1504_v22  ;;  %v255_v26 = vpop.f32.mrb[1].mxu0  ;;  %v328_v35 = vadd.f32 %v1257_v32, %v1504_v22  ;;  %v319_v36 = vpop.f32.mrb[1].mxu1 }
  0xdf   :  { %v256_v27 = vadd.f32 %v1504_v22, %v255_v26  ;;  %v1242_v28 = vpop.f32.mrb[2].mxu0  ;;  %v320_v39 = vadd.f32 %v1504_v22, %v319_v36  ;;  %v1258_v40 = vpop.f32.mrb[2].mxu1 }
  0xe0   :  { %vm384_vm1 = vcmp.gt.f32.partialorder %v264_v25, 0.0  ;;  %v417_v29 = vmul.f32 %v1509_v24, %v264_v25  ;;  %v267_v30 = vadd.f32 %v1242_v28, %v1504_v22  ;;  %v258_v31 = vpop.f32.mrb[3].mxu0  ;;  %vm400_vm5 = vcmp.gt.f32.partialorder %v328_v35, 0.0  ;;  %v322_v43 = vpop.f32.mrb[3].mxu1 }
  0xe1   :  { %vm382_vm2 = vcmp.gt.f32.partialorder %v256_v27, 0.0  ;;  %v415_v33 = vmul.f32 %v1509_v24, %v256_v27  ;;  %v259_v34 = vadd.f32 %v1504_v22, %v258_v31  ;;  %v433_v45 = vmul.f32 %v1509_v24, %v328_v35 }
  0xe2   :  { %v449_v37 = vsel %vm384_vm1, %v264_v25, %v417_v29  ;;  %vm385_vm3 = vcmp.gt.f32.partialorder %v267_v30, 0.0  ;;  %v418_v38 = vmul.f32 %v1509_v24, %v267_v30  ;;  %vm398_vm6 = vcmp.gt.f32.partialorder %v320_v39, 0.0 }
  0xe3   :  { %v447_v41 = vsel %vm382_vm2, %v256_v27, %v415_v33  ;;  %vm383_vm4 = vcmp.gt.f32.partialorder %v259_v34, 0.0  ;;  %v416_v42 = vmul.f32 %v1509_v24, %v259_v34  ;;  %v431_v46 = vmul.f32 %v1509_v24, %v320_v39 }
  0xe4   :  { %v450_v44 = vsel %vm385_vm3, %v267_v30, %v418_v38  ;;  %v331_v50 = vadd.f32 %v1258_v40, %v1504_v22  ;;  %v323_v51 = vadd.f32 %v1504_v22, %v322_v43  ;;  %v1526_v55 = vsel %vm400_vm5, %v328_v35, %v433_v45 }
  0xe5   :  { %v480_v47 = vpack.c.bf16 %v450_v44, %v449_v37  ;;  %v448_v48 = vsel %vm383_vm4, %v259_v34, %v416_v42  ;;  %v1245_v49 = vpop.f32.mrb[4].mxu0  ;;  %v1528_v56 = vsel %vm398_vm6, %v320_v39, %v431_v46  ;;  %v1261_v0 = vpop.f32.mrb[4].mxu1 }
  0xe6   :  { %v479_v52 = vpack.c.bf16 %v448_v48, %v447_v41  ;;  %v280_v53 = vadd.f32 %v1245_v49, %v1504_v22  ;;  %v271_v54 = vpop.f32.mrb[5].mxu0  ;;  %vm401_vm7 = vcmp.gt.f32.partialorder %v331_v50, 0.0  ;;  %v434_v59 = vmul.f32 %v1509_v24, %v331_v50  ;;  %v335_v4 = vpop.f32.mrb[5].mxu1 }
  0xe7   :  { %v272_v57 = vadd.f32 %v1504_v22, %v271_v54  ;;  %v1246_v58 = vpop.f32.mrb[6].mxu0  ;;  %vm399_vm8 = vcmp.gt.f32.partialorder %v323_v51, 0.0  ;;  %v432_v63 = vmul.f32 %v1509_v24, %v323_v51  ;;  %v1262_v8 = vpop.f32.mrb[6].mxu1  ;;  %v344_v15 = vadd.f32 %v1261_v0, %v1504_v22 }
  0xe8   :  { %vm388_vm9 = vcmp.gt.f32.partialorder %v280_v53, 0.0  ;;  %v421_v60 = vmul.f32 %v1509_v24, %v280_v53  ;;  %v283_v61 = vadd.f32 %v1246_v58, %v1504_v22  ;;  %v274_v62 = vpop.f32.mrb[7].mxu0  ;;  %1275 = vmatprep.mubr.msk.bf16.mxu1 %vm172_vm0, %v479_v52  ;;  %v1539_v3 = vsel %vm401_vm7, %v331_v50, %v434_v59  ;;  %v338_v12 = vpop.f32.mrb[7].mxu1 }
  0xe9   :  { %vm386_vm10 = vcmp.gt.f32.partialorder %v272_v57, 0.0  ;;  %v419_v1 = vmul.f32 %v1509_v24, %v272_v57  ;;  %v275_v2 = vadd.f32 %v1504_v22, %v274_v62  ;;  %1276 = vmatmul.mubr.msk.bf16.vlgmr.msra.gmra.mrb[16].mxu1 %vm172_vm0, %v480_v47  ;;  %v488_v7 = vpack.c.bf16 %v1539_v3, %v1526_v55 }
  0xea   :  { %v453_v5 = vsel %vm388_vm9, %v280_v53, %v421_v60  ;;  %vm389_vm11 = vcmp.gt.f32.partialorder %v283_v61, 0.0  ;;  %v422_v6 = vmul.f32 %v1509_v24, %v283_v61  ;;  %v1546_v11 = vsel %vm399_vm8, %v323_v51, %v432_v63 }
  0xeb   :  { %v451_v9 = vsel %vm386_vm10, %v272_v57, %v419_v1  ;;  %vm387_vm12 = vcmp.gt.f32.partialorder %v275_v2, 0.0  ;;  %v420_v10 = vmul.f32 %v1509_v24, %v275_v2  ;;  %v487_v14 = vpack.c.bf16 %v1546_v11, %v1528_v56 }
  0xec   :  { %v454_v13 = vsel %vm389_vm11, %v283_v61, %v422_v6  ;;  %v336_v16 = vadd.f32 %v1504_v22, %v335_v4  ;;  %v347_v20 = vadd.f32 %v1262_v8, %v1504_v22  ;;  %v339_v21 = vadd.f32 %v1504_v22, %v338_v12 }
  0xed   :  { %v482_v17 = vpack.c.bf16 %v454_v13, %v453_v5  ;;  %v452_v18 = vsel %vm387_vm12, %v275_v2, %v420_v10  ;;  %v1249_v19 = vpop.f32.mrb[8].mxu0  ;;  %vm404_vm13 = vcmp.gt.f32.partialorder %v344_v15, 0.0  ;;  %v437_v27 = vmul.f32 %v1509_v24, %v344_v15  ;;  %v1265_v35 = vpop.f32.mrb[8].mxu1 }
  0xee   :  { %v481_v23 = vpack.c.bf16 %v452_v18, %v451_v9  ;;  %v296_v25 = vadd.f32 %v1249_v19, %v1504_v22  ;;  %v287_v26 = vpop.f32.mrb[9].mxu0  ;;  %vm402_vm14 = vcmp.gt.f32.partialorder %v336_v16, 0.0  ;;  %v435_v30 = vmul.f32 %v1509_v24, %v336_v16  ;;  %v351_v39 = vpop.f32.mrb[9].mxu1 }
  0xef   :  { %v288_v28 = vadd.f32 %v1504_v22, %v287_v26  ;;  %v1250_v29 = vpop.f32.mrb[10].mxu0  ;;  %vm405_vm15 = vcmp.gt.f32.partialorder %v347_v20, 0.0  ;;  %v1561_v34 = vsel %vm404_vm13, %v344_v15, %v437_v27  ;;  %v438_v42 = vmul.f32 %v1509_v24, %v347_v20  ;;  %v1266_v43 = vpop.f32.mrb[10].mxu1 }
  0xf0   :  { %vm392_vm1 = vcmp.gt.f32.partialorder %v296_v25, 0.0  ;;  %v425_v31 = vmul.f32 %v1509_v24, %v296_v25  ;;  %v299_v32 = vadd.f32 %v1250_v29, %v1504_v22  ;;  %v290_v33 = vpop.f32.mrb[11].mxu0  ;;  %1279 = vmatprep.mubr.msk.bf16.mxu1 %vm172_vm0, %v481_v23  ;;  %v1566_v38 = vsel %vm402_vm14, %v336_v16, %v435_v30  ;;  %v354_v46 = vpop.f32.mrb[11].mxu1 }
  0xf1   :  { %vm390_vm2 = vcmp.gt.f32.partialorder %v288_v28, 0.0  ;;  %v423_v36 = vmul.f32 %v1509_v24, %v288_v28  ;;  %v291_v37 = vadd.f32 %v1504_v22, %v290_v33  ;;  %1280 = vmatmul.mubr.msk.bf16.gmra.mrb[20].mxu1 %vm172_vm0, %v482_v17  ;;  %vm403_vm5 = vcmp.gt.f32.partialorder %v339_v21, 0.0 }
  0xf2   :  { %v457_v40 = vsel %vm392_vm1, %v296_v25, %v425_v31  ;;  %vm393_vm3 = vcmp.gt.f32.partialorder %v299_v32, 0.0  ;;  %v426_v41 = vmul.f32 %v1509_v24, %v299_v32  ;;  %v1572_v48 = vsel %vm405_vm15, %v347_v20, %v438_v42 }
  0xf3   :  { %v455_v44 = vsel %vm390_vm2, %v288_v28, %v423_v36  ;;  %vm391_vm4 = vcmp.gt.f32.partialorder %v291_v37, 0.0  ;;  %v424_v45 = vmul.f32 %v1509_v24, %v291_v37  ;;  %v436_v49 = vmul.f32 %v1509_v24, %v339_v21 }
  0xf4   :  { %v458_v47 = vsel %vm393_vm3, %v299_v32, %v426_v41  ;;  %v360_v50 = vadd.f32 %v1265_v35, %v1504_v22  ;;  %v490_v54 = vpack.c.bf16 %v1572_v48, %v1561_v34  ;;  %v352_v57 = vadd.f32 %v1504_v22, %v351_v39 }
  0xf5   :  { %v484_v51 = vpack.c.bf16 %v458_v47, %v457_v40  ;;  %v456_v52 = vsel %vm391_vm4, %v291_v37, %v424_v45  ;;  %v1253_v53 = vpop.f32.mrb[12].mxu0  ;;  %v1580_v61 = vsel %vm403_vm5, %v339_v21, %v436_v49  ;;  %v1269_v8 = vpop.f32.mrb[12].mxu1  ;;  %v363_v21 = vadd.f32 %v1266_v43, %v1504_v22 }
  0xf6   :  { %v483_v58 = vpack.c.bf16 %v456_v52, %v455_v44  ;;  %v312_v59 = vadd.f32 %v1253_v53, %v1504_v22  ;;  %v303_v60 = vpop.f32.mrb[13].mxu0  ;;  %vm408_vm6 = vcmp.gt.f32.partialorder %v360_v50, 0.0  ;;  %v489_v0 = vpack.c.bf16 %v1580_v61, %v1566_v38  ;;  %v367_v13 = vpop.f32.mrb[13].mxu1 }
  0xf7   :  { %v304_v62 = vadd.f32 %v1504_v22, %v303_v60  ;;  %v1254_v63 = vpop.f32.mrb[14].mxu0  ;;  %v441_v1 = vmul.f32 %v1509_v24, %v360_v50  ;;  %vm406_vm7 = vcmp.gt.f32.partialorder %v352_v57, 0.0  ;;  %v439_v6 = vmul.f32 %v1509_v24, %v352_v57  ;;  %v1270_v18 = vpop.f32.mrb[14].mxu1 }
  0xf8   :  { %vm396_vm8 = vcmp.gt.f32.partialorder %v312_v59, 0.0  ;;  %v429_v2 = vmul.f32 %v1509_v24, %v312_v59  ;;  %v315_v4 = vadd.f32 %v1254_v63, %v1504_v22  ;;  %v306_v5 = vpop.f32.mrb[15].mxu0  ;;  %1283 = vmatprep.mubr.msk.bf16.mxu1 %vm172_vm0, %v483_v58  ;;  %v370_v23 = vpop.f32.mrb[15].mxu1  ;;  %v355_v26 = vadd.f32 %v1504_v22, %v354_v46 }
  0xf9   :  { %vm394_vm9 = vcmp.gt.f32.partialorder %v304_v62, 0.0  ;;  %v427_v9 = vmul.f32 %v1509_v24, %v304_v62  ;;  %v307_v10 = vadd.f32 %v1504_v22, %v306_v5  ;;  %1284 = vmatmul.mubr.msk.bf16.gmra.mrb[24].mxu1 %vm172_vm0, %v484_v51  ;;  %v473_v12 = vsel %vm408_vm6, %v360_v50, %v441_v1 }
  0xfa   :  { %v461_v15 = vsel %vm396_vm8, %v312_v59, %v429_v2  ;;  %vm397_vm10 = vcmp.gt.f32.partialorder %v315_v4, 0.0  ;;  %v430_v16 = vmul.f32 %v1509_v24, %v315_v4  ;;  %v471_v17 = vsel %vm406_vm7, %v352_v57, %v439_v6 }
  0xfb   :  { %v459_v19 = vsel %vm394_vm9, %v304_v62, %v427_v9  ;;  %vm395_vm11 = vcmp.gt.f32.partialorder %v307_v10, 0.0  ;;  %v428_v20 = vmul.f32 %v1509_v24, %v307_v10  ;;  %v376_v27 = vadd.f32 %v1269_v8, %v1504_v22 }
  0xfc   :  { %v462_v25 = vsel %vm397_vm10, %v315_v4, %v430_v16  ;;  %v368_v28 = vadd.f32 %v1504_v22, %v367_v13  ;;  %vm409_vm12 = vcmp.gt.f32.partialorder %v363_v21, 0.0  ;;  %v442_v31 = vmul.f32 %v1509_v24, %v363_v21 }
  0xfd   :  { %v486_v29 = vpack.c.bf16 %v462_v25, %v461_v15  ;;  %v460_v30 = vsel %vm395_vm11, %v307_v10, %v428_v20  ;;  %vm407_vm13 = vcmp.gt.f32.partialorder %v355_v26, 0.0  ;;  %v440_v33 = vmul.f32 %v1509_v24, %v355_v26 }
  0xfe   :  { %v485_v32 = vpack.c.bf16 %v460_v30, %v459_v19  ;;  %vm412_vm14 = vcmp.gt.f32.partialorder %v376_v27, 0.0  ;;  %v474_v35 = vsel %vm409_vm12, %v363_v21, %v442_v31  ;;  %v445_v36 = vmul.f32 %v1509_v24, %v376_v27 }
  0xff   :  { %vm410_vm15 = vcmp.gt.f32.partialorder %v368_v28, 0.0  ;;  %v443_v37 = vmul.f32 %v1509_v24, %v368_v28  ;;  %v492_v38 = vpack.c.bf16 %v474_v35, %v473_v12  ;;  %v472_v39 = vsel %vm407_vm13, %v355_v26, %v440_v33 }
 0x100   :  { %1287 = vmatprep.mubr.msk.bf16.mxu1 %vm172_vm0, %v485_v32  ;;  %v379_v40 = vadd.f32 %v1270_v18, %v1504_v22  ;;  %v371_v41 = vadd.f32 %v1504_v22, %v370_v23  ;;  %v491_v42 = vpack.c.bf16 %v472_v39, %v471_v17  ;;  %v477_v43 = vsel %vm412_vm14, %v376_v27, %v445_v36 }
 0x101   :  { %1288 = vmatmul.mubr.msk.bf16.gmra.mrb[28].mxu1 %vm172_vm0, %v486_v29  ;;  %v475_v44 = vsel %vm410_vm15, %v368_v28, %v443_v37  ;;  %v1636_v56 = vstv %s1858_s6 }
 0x102   :  { %1291 = vmatprep.mubr.msk.bf16.mxu1 %vm172_vm0, %v487_v14  ;;  %vm413_vm1 = vcmp.gt.f32.partialorder %v379_v40, 0.0  ;;  %v446_v45 = vmul.f32 %v1509_v24, %v379_v40  ;;  %vm411_vm2 = vcmp.gt.f32.partialorder %v371_v41, 0.0  ;;  %v444_v46 = vmul.f32 %v1509_v24, %v371_v41  ;;  %v1631_v24 = vld [vmem:[%s1857_s5] ss:$0 sm:$0xff] }
 0x104   :  { %v478_v47 = vsel %vm413_vm1, %v379_v40, %v446_v45  ;;  %v476_v49 = vsel %vm411_vm2, %v371_v41, %v444_v46 }
 0x105   :  { %v494_v50 = vpack.c.bf16 %v478_v47, %v477_v43  ;;  %v493_v22 = vpack.c.bf16 %v476_v49, %v475_v44 }
 0x109   :  { %1292 = vmatmul.mubr.msk.bf16.gmra.mrb[32].mxu1 %vm172_vm0, %v488_v7 }
 0x10a   :  { %1295 = vmatprep.mubr.msk.bf16.mxu1 %vm172_vm0, %v489_v0 }
 0x111   :  { %1296 = vmatmul.mubr.msk.bf16.gmra.mrb[36].mxu1 %vm172_vm0, %v490_v54 }
 0x112   :  { %1299 = vmatprep.mubr.msk.bf16.mxu1 %vm172_vm0, %v491_v42 }
 0x119   :  { %1300 = vmatmul.mubr.msk.bf16.gmra.mrb[40].mxu1 %vm172_vm0, %v492_v38 }
 0x11a   :  { %1303 = vmatprep.mubr.msk.bf16.mxu1 %vm172_vm0, %v493_v22 }
 0x121   :  { %1304 = vmatmul.mubr.msk.bf16.gmra.mrb[44].mxu1 %vm172_vm0, %v494_v50 }
 0x1bc   :  { %v1277_v55 = vpop.f32.mrb[16].mxu1 }
 0x1bd   :  { %v609_v3 = vadd.f32 %v1277_v55, %v1631_v24  ;;  %v600_v7 = vpop.f32.mrb[17].mxu1 }
 0x1be   :  { %v601_v11 = vadd.f32 %v1631_v24, %v600_v7  ;;  %v1278_v14 = vpop.f32.mrb[18].mxu1 }
 0x1bf   :  { %v762_v34 = vmul.f32 %v1636_v56, %v609_v3  ;;  %v612_v48 = vadd.f32 %v1278_v14, %v1631_v24  ;;  %v603_v51 = vpop.f32.mrb[19].mxu1  ;;  %vm729_vm3 = vcmp.gt.f32.partialorder %v609_v3, 0.0 }
 0x1c0   :  { %v760_v52 = vmul.f32 %v1636_v56, %v601_v11  ;;  %v604_v53 = vadd.f32 %v1631_v24, %v603_v51  ;;  %vm727_vm4 = vcmp.gt.f32.partialorder %v601_v11, 0.0 }
 0x1c1   :  { %vm730_vm5 = vcmp.gt.f32.partialorder %v612_v48, 0.0  ;;  %v763_v54 = vmul.f32 %v1636_v56, %v612_v48  ;;  %v794_v58 = vsel %vm729_vm3, %v609_v3, %v762_v34 }
 0x1c2   :  { %vm728_vm6 = vcmp.gt.f32.partialorder %v604_v53, 0.0  ;;  %v761_v57 = vmul.f32 %v1636_v56, %v604_v53  ;;  %v792_v60 = vsel %vm727_vm4, %v601_v11, %v760_v52 }
 0x1c3   :  { %v795_v59 = vsel %vm730_vm5, %v612_v48, %v763_v54 }
 0x1c4   :  { %v825_v61 = vpack.c.bf16 %v795_v59, %v794_v58  ;;  %v793_v62 = vsel %vm728_vm6, %v604_v53, %v761_v57  ;;  %v1281_v63 = vpop.f32.mrb[20].mxu1 }
 0x1c5   :  { %v824_v0 = vpack.c.bf16 %v793_v62, %v792_v60  ;;  %v625_v1 = vadd.f32 %v1281_v63, %v1631_v24  ;;  %v616_v2 = vpop.f32.mrb[21].mxu1 }
 0x1c6   :  { %v617_v4 = vadd.f32 %v1631_v24, %v616_v2  ;;  %v1282_v5 = vpop.f32.mrb[22].mxu1 }
 0x1c7   :  { %v766_v6 = vmul.f32 %v1636_v56, %v625_v1  ;;  %v628_v8 = vadd.f32 %v1282_v5, %v1631_v24  ;;  %v619_v9 = vpop.f32.mrb[23].mxu1  ;;  %1311 = vmatprep.mubr.msk.bf16.mxu0 %vm172_vm0, %v824_v0  ;;  %vm733_vm7 = vcmp.gt.f32.partialorder %v625_v1, 0.0 }
 0x1c8   :  { %v764_v10 = vmul.f32 %v1636_v56, %v617_v4  ;;  %v620_v12 = vadd.f32 %v1631_v24, %v619_v9  ;;  %1312 = vmatmul.mubr.msk.bf16.vlgmr.msra.gmra.mrb[16].mxu0 %vm172_vm0, %v825_v61  ;;  %vm731_vm8 = vcmp.gt.f32.partialorder %v617_v4, 0.0 }
 0x1c9   :  { %vm734_vm9 = vcmp.gt.f32.partialorder %v628_v8, 0.0  ;;  %v767_v13 = vmul.f32 %v1636_v56, %v628_v8  ;;  %v798_v16 = vsel %vm733_vm7, %v625_v1, %v766_v6 }
 0x1ca   :  { %vm732_vm10 = vcmp.gt.f32.partialorder %v620_v12, 0.0  ;;  %v765_v15 = vmul.f32 %v1636_v56, %v620_v12  ;;  %v796_v18 = vsel %vm731_vm8, %v617_v4, %v764_v10 }
 0x1cb   :  { %v799_v17 = vsel %vm734_vm9, %v628_v8, %v767_v13 }
 0x1cc   :  { %v827_v19 = vpack.c.bf16 %v799_v17, %v798_v16  ;;  %v797_v20 = vsel %vm732_vm10, %v620_v12, %v765_v15  ;;  %v1285_v21 = vpop.f32.mrb[24].mxu1 }
 0x1cd   :  { %v826_v23 = vpack.c.bf16 %v797_v20, %v796_v18  ;;  %v641_v25 = vadd.f32 %v1285_v21, %v1631_v24  ;;  %v632_v26 = vpop.f32.mrb[25].mxu1 }
 0x1ce   :  { %v633_v27 = vadd.f32 %v1631_v24, %v632_v26  ;;  %v1286_v28 = vpop.f32.mrb[26].mxu1 }
 0x1cf   :  { %v770_v29 = vmul.f32 %v1636_v56, %v641_v25  ;;  %v644_v30 = vadd.f32 %v1286_v28, %v1631_v24  ;;  %v635_v31 = vpop.f32.mrb[27].mxu1  ;;  %1315 = vmatprep.mubr.msk.bf16.mxu0 %vm172_vm0, %v826_v23  ;;  %vm737_vm11 = vcmp.gt.f32.partialorder %v641_v25, 0.0 }
 0x1d0   :  { %v768_v32 = vmul.f32 %v1636_v56, %v633_v27  ;;  %v636_v33 = vadd.f32 %v1631_v24, %v635_v31  ;;  %1316 = vmatmul.mubr.msk.bf16.gmra.mrb[20].mxu0 %vm172_vm0, %v827_v19  ;;  %vm735_vm12 = vcmp.gt.f32.partialorder %v633_v27, 0.0 }
 0x1d1   :  { %vm738_vm13 = vcmp.gt.f32.partialorder %v644_v30, 0.0  ;;  %v771_v35 = vmul.f32 %v1636_v56, %v644_v30  ;;  %v802_v37 = vsel %vm737_vm11, %v641_v25, %v770_v29 }
 0x1d2   :  { %vm736_vm14 = vcmp.gt.f32.partialorder %v636_v33, 0.0  ;;  %v769_v36 = vmul.f32 %v1636_v56, %v636_v33  ;;  %v800_v39 = vsel %vm735_vm12, %v633_v27, %v768_v32 }
 0x1d3   :  { %v803_v38 = vsel %vm738_vm13, %v644_v30, %v771_v35 }
 0x1d4   :  { %v829_v40 = vpack.c.bf16 %v803_v38, %v802_v37  ;;  %v801_v41 = vsel %vm736_vm14, %v636_v33, %v769_v36  ;;  %v1289_v42 = vpop.f32.mrb[28].mxu1 }
 0x1d5   :  { %v828_v43 = vpack.c.bf16 %v801_v41, %v800_v39  ;;  %v657_v44 = vadd.f32 %v1289_v42, %v1631_v24  ;;  %v648_v45 = vpop.f32.mrb[29].mxu1 }
 0x1d6   :  { %v649_v46 = vadd.f32 %v1631_v24, %v648_v45  ;;  %v1290_v47 = vpop.f32.mrb[30].mxu1 }
 0x1d7   :  { %v774_v49 = vmul.f32 %v1636_v56, %v657_v44  ;;  %v660_v50 = vadd.f32 %v1290_v47, %v1631_v24  ;;  %v651_v22 = vpop.f32.mrb[31].mxu1  ;;  %1319 = vmatprep.mubr.msk.bf16.mxu0 %vm172_vm0, %v828_v43  ;;  %vm741_vm15 = vcmp.gt.f32.partialorder %v657_v44, 0.0 }
 0x1d8   :  { %v772_v55 = vmul.f32 %v1636_v56, %v649_v46  ;;  %v652_v3 = vadd.f32 %v1631_v24, %v651_v22  ;;  %1320 = vmatmul.mubr.msk.bf16.gmra.mrb[24].mxu0 %vm172_vm0, %v829_v40  ;;  %vm739_vm1 = vcmp.gt.f32.partialorder %v649_v46, 0.0 }
 0x1d9   :  { %vm742_vm2 = vcmp.gt.f32.partialorder %v660_v50, 0.0  ;;  %v775_v7 = vmul.f32 %v1636_v56, %v660_v50  ;;  %v806_v14 = vsel %vm741_vm15, %v657_v44, %v774_v49 }
 0x1da   :  { %vm740_vm3 = vcmp.gt.f32.partialorder %v652_v3, 0.0  ;;  %v773_v11 = vmul.f32 %v1636_v56, %v652_v3  ;;  %v804_v48 = vsel %vm739_vm1, %v649_v46, %v772_v55 }
 0x1db   :  { %v807_v34 = vsel %vm742_vm2, %v660_v50, %v775_v7 }
 0x1dc   :  { %v831_v51 = vpack.c.bf16 %v807_v34, %v806_v14  ;;  %v805_v52 = vsel %vm740_vm3, %v652_v3, %v773_v11  ;;  %v1293_v53 = vpop.f32.mrb[32].mxu1 }
 0x1dd   :  { %v830_v54 = vpack.c.bf16 %v805_v52, %v804_v48  ;;  %v673_v57 = vadd.f32 %v1293_v53, %v1631_v24  ;;  %v664_v58 = vpop.f32.mrb[33].mxu1 }
 0x1de   :  { %v665_v59 = vadd.f32 %v1631_v24, %v664_v58  ;;  %v1294_v60 = vpop.f32.mrb[34].mxu1 }
 0x1df   :  { %v778_v61 = vmul.f32 %v1636_v56, %v673_v57  ;;  %v676_v62 = vadd.f32 %v1294_v60, %v1631_v24  ;;  %v667_v63 = vpop.f32.mrb[35].mxu1  ;;  %1323 = vmatprep.mubr.msk.bf16.mxu0 %vm172_vm0, %v830_v54  ;;  %vm745_vm4 = vcmp.gt.f32.partialorder %v673_v57, 0.0 }
 0x1e0   :  { %v776_v0 = vmul.f32 %v1636_v56, %v665_v59  ;;  %v668_v1 = vadd.f32 %v1631_v24, %v667_v63  ;;  %1324 = vmatmul.mubr.msk.bf16.gmra.mrb[28].mxu0 %vm172_vm0, %v831_v51  ;;  %vm743_vm5 = vcmp.gt.f32.partialorder %v665_v59, 0.0 }
 0x1e1   :  { %vm746_vm6 = vcmp.gt.f32.partialorder %v676_v62, 0.0  ;;  %v779_v2 = vmul.f32 %v1636_v56, %v676_v62  ;;  %v810_v5 = vsel %vm745_vm4, %v673_v57, %v778_v61 }
 0x1e2   :  { %vm744_vm7 = vcmp.gt.f32.partialorder %v668_v1, 0.0  ;;  %v777_v4 = vmul.f32 %v1636_v56, %v668_v1  ;;  %v808_v8 = vsel %vm743_vm5, %v665_v59, %v776_v0 }
 0x1e3   :  { %v811_v6 = vsel %vm746_vm6, %v676_v62, %v779_v2 }
 0x1e4   :  { %v833_v9 = vpack.c.bf16 %v811_v6, %v810_v5  ;;  %v809_v10 = vsel %vm744_vm7, %v668_v1, %v777_v4  ;;  %v1297_v12 = vpop.f32.mrb[36].mxu1 }
 0x1e5   :  { %v832_v13 = vpack.c.bf16 %v809_v10, %v808_v8  ;;  %v689_v15 = vadd.f32 %v1297_v12, %v1631_v24  ;;  %v680_v16 = vpop.f32.mrb[37].mxu1 }
 0x1e6   :  { %v681_v17 = vadd.f32 %v1631_v24, %v680_v16  ;;  %v1298_v18 = vpop.f32.mrb[38].mxu1 }
 0x1e7   :  { %v782_v19 = vmul.f32 %v1636_v56, %v689_v15  ;;  %v692_v20 = vadd.f32 %v1298_v18, %v1631_v24  ;;  %v683_v21 = vpop.f32.mrb[39].mxu1  ;;  %1327 = vmatprep.mubr.msk.bf16.mxu0 %vm172_vm0, %v832_v13  ;;  %vm749_vm8 = vcmp.gt.f32.partialorder %v689_v15, 0.0 }
 0x1e8   :  { %v780_v23 = vmul.f32 %v1636_v56, %v681_v17  ;;  %v684_v25 = vadd.f32 %v1631_v24, %v683_v21  ;;  %1328 = vmatmul.mubr.msk.bf16.gmra.mrb[32].mxu0 %vm172_vm0, %v833_v9  ;;  %vm747_vm9 = vcmp.gt.f32.partialorder %v681_v17, 0.0 }
 0x1e9   :  { %vm750_vm10 = vcmp.gt.f32.partialorder %v692_v20, 0.0  ;;  %v783_v26 = vmul.f32 %v1636_v56, %v692_v20  ;;  %v814_v28 = vsel %vm749_vm8, %v689_v15, %v782_v19 }
 0x1ea   :  { %vm748_vm11 = vcmp.gt.f32.partialorder %v684_v25, 0.0  ;;  %v781_v27 = vmul.f32 %v1636_v56, %v684_v25  ;;  %v812_v30 = vsel %vm747_vm9, %v681_v17, %v780_v23 }
 0x1eb   :  { %v815_v29 = vsel %vm750_vm10, %v692_v20, %v783_v26 }
 0x1ec   :  { %v835_v31 = vpack.c.bf16 %v815_v29, %v814_v28  ;;  %v813_v32 = vsel %vm748_vm11, %v684_v25, %v781_v27  ;;  %v1301_v33 = vpop.f32.mrb[40].mxu1 }
 0x1ed   :  { %v834_v35 = vpack.c.bf16 %v813_v32, %v812_v30  ;;  %v705_v36 = vadd.f32 %v1301_v33, %v1631_v24  ;;  %v696_v37 = vpop.f32.mrb[41].mxu1 }
 0x1ee   :  { %v697_v38 = vadd.f32 %v1631_v24, %v696_v37  ;;  %v1302_v39 = vpop.f32.mrb[42].mxu1 }
 0x1ef   :  { %v786_v40 = vmul.f32 %v1636_v56, %v705_v36  ;;  %v708_v41 = vadd.f32 %v1302_v39, %v1631_v24  ;;  %v699_v42 = vpop.f32.mrb[43].mxu1  ;;  %1331 = vmatprep.mubr.msk.bf16.mxu0 %vm172_vm0, %v834_v35  ;;  %vm753_vm12 = vcmp.gt.f32.partialorder %v705_v36, 0.0 }
 0x1f0   :  { %v784_v43 = vmul.f32 %v1636_v56, %v697_v38  ;;  %v700_v44 = vadd.f32 %v1631_v24, %v699_v42  ;;  %1332 = vmatmul.mubr.msk.bf16.gmra.mrb[36].mxu0 %vm172_vm0, %v835_v31  ;;  %vm751_vm13 = vcmp.gt.f32.partialorder %v697_v38, 0.0 }
 0x1f1   :  { %vm754_vm14 = vcmp.gt.f32.partialorder %v708_v41, 0.0  ;;  %v787_v45 = vmul.f32 %v1636_v56, %v708_v41  ;;  %v818_v47 = vsel %vm753_vm12, %v705_v36, %v786_v40 }
 0x1f2   :  { %vm752_vm15 = vcmp.gt.f32.partialorder %v700_v44, 0.0  ;;  %v785_v46 = vmul.f32 %v1636_v56, %v700_v44  ;;  %v816_v50 = vsel %vm751_vm13, %v697_v38, %v784_v43 }
 0x1f3   :  { %v819_v49 = vsel %vm754_vm14, %v708_v41, %v787_v45 }
 0x1f4   :  { %v837_v22 = vpack.c.bf16 %v819_v49, %v818_v47  ;;  %v817_v55 = vsel %vm752_vm15, %v700_v44, %v785_v46  ;;  %v1305_v3 = vpop.f32.mrb[44].mxu1 }
 0x1f5   :  { %v836_v7 = vpack.c.bf16 %v817_v55, %v816_v50  ;;  %v721_v11 = vadd.f32 %v1305_v3, %v1631_v24  ;;  %v712_v14 = vpop.f32.mrb[45].mxu1 }
 0x1f6   :  { %v713_v34 = vadd.f32 %v1631_v24, %v712_v14  ;;  %v1306_v48 = vpop.f32.mrb[46].mxu1 }
 0x1f7   :  { %v790_v51 = vmul.f32 %v1636_v56, %v721_v11  ;;  %v724_v52 = vadd.f32 %v1306_v48, %v1631_v24  ;;  %v715_v53 = vpop.f32.mrb[47].mxu1  ;;  %1335 = vmatprep.mubr.msk.bf16.mxu0 %vm172_vm0, %v836_v7  ;;  %vm757_vm1 = vcmp.gt.f32.partialorder %v721_v11, 0.0 }
 0x1f8   :  { %v788_v54 = vmul.f32 %v1636_v56, %v713_v34  ;;  %v716_v57 = vadd.f32 %v1631_v24, %v715_v53  ;;  %1336 = vmatmul.mubr.msk.bf16.gmra.mrb[40].mxu0 %vm172_vm0, %v837_v22  ;;  %vm755_vm2 = vcmp.gt.f32.partialorder %v713_v34, 0.0  ;;  %v1721_v24 = vld [vmem:[%s1859_s8] ss:$0 sm:$0xff] }
 0x1f9   :  { %vm758_vm3 = vcmp.gt.f32.partialorder %v724_v52, 0.0  ;;  %v791_v58 = vmul.f32 %v1636_v56, %v724_v52  ;;  %v822_v60 = vsel %vm757_vm1, %v721_v11, %v790_v51 }
 0x1fa   :  { %vm756_vm4 = vcmp.gt.f32.partialorder %v716_v57, 0.0  ;;  %v789_v59 = vmul.f32 %v1636_v56, %v716_v57  ;;  %v820_v62 = vsel %vm755_vm2, %v713_v34, %v788_v54 }
 0x1fb   :  { %v823_v61 = vsel %vm758_vm3, %v724_v52, %v791_v58 }
 0x1fc   :  { %v839_v63 = vpack.c.bf16 %v823_v61, %v822_v60  ;;  %v821_v0 = vsel %vm756_vm4, %v716_v57, %v789_v59 }
 0x1fd   :  { %v838_v1 = vpack.c.bf16 %v821_v0, %v820_v62 }
 0x1ff   :  { %1339 = vmatprep.mubr.msk.bf16.mxu0 %vm172_vm0, %v838_v1 }
 0x200   :  { %1340 = vmatmul.mubr.msk.bf16.gmra.mrb[44].mxu0 %vm172_vm0, %v839_v63 }
 0x29b   :  { %v1313_v2 = vpop.f32.mrb[16].mxu0 }
 0x29c   :  { %v954_v4 = vadd.f32 %v1313_v2, %v1721_v24  ;;  %v945_v5 = vpop.f32.mrb[17].mxu0 }
 0x29d   :  { %v946_v56 = vadd.f32 %v1721_v24, %v945_v5  ;;  %v1314_v6 = vpop.f32.mrb[18].mxu0 }
 0x29e   :  { %1074 = vst [vmem:[%s1860_s9 + $0x10] sm:$0xff] %v954_v4  ;;  %v957_v8 = vadd.f32 %v1314_v6, %v1721_v24  ;;  %v948_v9 = vpop.f32.mrb[19].mxu0 }
 0x29f   :  { %1072 = vst [vmem:[%s1860_s9] sm:$0xff] %v946_v56  ;;  %v949_v10 = vadd.f32 %v1721_v24, %v948_v9 }
 0x2a0   :  { %1075 = vst [vmem:[%s1860_s9 + $0x18] sm:$0xff] %v957_v8 }
 0x2a1   :  { %1073 = vst [vmem:[%s1860_s9 + $0x8] sm:$0xff] %v949_v10 }
 0x2a3   :  { %v1317_v12 = vpop.f32.mrb[20].mxu0 }
 0x2a4   :  { %v970_v13 = vadd.f32 %v1317_v12, %v1721_v24  ;;  %v961_v15 = vpop.f32.mrb[21].mxu0 }
 0x2a5   :  { %v962_v16 = vadd.f32 %v1721_v24, %v961_v15  ;;  %v1318_v17 = vpop.f32.mrb[22].mxu0 }
 0x2a6   :  { %1078 = vst [vmem:[%s1860_s9 + $0x30] sm:$0xff] %v970_v13  ;;  %v973_v18 = vadd.f32 %v1318_v17, %v1721_v24  ;;  %v964_v19 = vpop.f32.mrb[23].mxu0 }
 0x2a7   :  { %1076 = vst [vmem:[%s1860_s9 + $0x20] sm:$0xff] %v962_v16  ;;  %v965_v20 = vadd.f32 %v1721_v24, %v964_v19 }
 0x2a8   :  { %1079 = vst [vmem:[%s1860_s9 + $0x38] sm:$0xff] %v973_v18 }
 0x2a9   :  { %1077 = vst [vmem:[%s1860_s9 + $0x28] sm:$0xff] %v965_v20 }
 0x2ab   :  { %v1321_v21 = vpop.f32.mrb[24].mxu0 }
 0x2ac   :  { %v986_v23 = vadd.f32 %v1321_v21, %v1721_v24  ;;  %v977_v25 = vpop.f32.mrb[25].mxu0 }
 0x2ad   :  { %v978_v26 = vadd.f32 %v1721_v24, %v977_v25  ;;  %v1322_v27 = vpop.f32.mrb[26].mxu0 }
 0x2ae   :  { %1082 = vst [vmem:[%s1860_s9 + $0x50] sm:$0xff] %v986_v23  ;;  %v989_v28 = vadd.f32 %v1322_v27, %v1721_v24  ;;  %v980_v29 = vpop.f32.mrb[27].mxu0 }
 0x2af   :  { %1080 = vst [vmem:[%s1860_s9 + $0x40] sm:$0xff] %v978_v26  ;;  %v981_v30 = vadd.f32 %v1721_v24, %v980_v29 }
 0x2b0   :  { %1083 = vst [vmem:[%s1860_s9 + $0x58] sm:$0xff] %v989_v28 }
 0x2b1   :  { %1081 = vst [vmem:[%s1860_s9 + $0x48] sm:$0xff] %v981_v30 }
 0x2b3   :  { %v1325_v31 = vpop.f32.mrb[28].mxu0 }
 0x2b4   :  { %v1002_v32 = vadd.f32 %v1325_v31, %v1721_v24  ;;  %v993_v33 = vpop.f32.mrb[29].mxu0 }
 0x2b5   :  { %v994_v35 = vadd.f32 %v1721_v24, %v993_v33  ;;  %v1326_v36 = vpop.f32.mrb[30].mxu0 }
 0x2b6   :  { %1086 = vst [vmem:[%s1860_s9 + $0x70] sm:$0xff] %v1002_v32  ;;  %v1005_v37 = vadd.f32 %v1326_v36, %v1721_v24  ;;  %v996_v38 = vpop.f32.mrb[31].mxu0 }
 0x2b7   :  { %1084 = vst [vmem:[%s1860_s9 + $0x60] sm:$0xff] %v994_v35  ;;  %v997_v39 = vadd.f32 %v1721_v24, %v996_v38 }
 0x2b8   :  { %1087 = vst [vmem:[%s1860_s9 + $0x78] sm:$0xff] %v1005_v37 }
 0x2b9   :  { %1085 = vst [vmem:[%s1860_s9 + $0x68] sm:$0xff] %v997_v39 }
 0x2bb   :  { %v1329_v40 = vpop.f32.mrb[32].mxu0 }
 0x2bc   :  { %v1018_v41 = vadd.f32 %v1329_v40, %v1721_v24  ;;  %v1009_v42 = vpop.f32.mrb[33].mxu0 }
 0x2bd   :  { %v1010_v43 = vadd.f32 %v1721_v24, %v1009_v42  ;;  %v1330_v44 = vpop.f32.mrb[34].mxu0 }
 0x2be   :  { %1090 = vst [vmem:[%s1860_s9 + $0x90] sm:$0xff] %v1018_v41  ;;  %v1021_v45 = vadd.f32 %v1330_v44, %v1721_v24  ;;  %v1012_v46 = vpop.f32.mrb[35].mxu0 }
 0x2bf   :  { %1088 = vst [vmem:[%s1860_s9 + $0x80] sm:$0xff] %v1010_v43  ;;  %v1013_v47 = vadd.f32 %v1721_v24, %v1012_v46 }
 0x2c0   :  { %1091 = vst [vmem:[%s1860_s9 + $0x98] sm:$0xff] %v1021_v45 }
 0x2c1   :  { %1089 = vst [vmem:[%s1860_s9 + $0x88] sm:$0xff] %v1013_v47 }
 0x2c3   :  { %v1333_v49 = vpop.f32.mrb[36].mxu0 }
 0x2c4   :  { %v1034_v50 = vadd.f32 %v1333_v49, %v1721_v24  ;;  %v1025_v22 = vpop.f32.mrb[37].mxu0 }
 0x2c5   :  { %v1026_v55 = vadd.f32 %v1721_v24, %v1025_v22  ;;  %v1334_v3 = vpop.f32.mrb[38].mxu0 }
 0x2c6   :  { %1094 = vst [vmem:[%s1860_s9 + $0xb0] sm:$0xff] %v1034_v50  ;;  %v1037_v7 = vadd.f32 %v1334_v3, %v1721_v24  ;;  %v1028_v11 = vpop.f32.mrb[39].mxu0 }
 0x2c7   :  { %1092 = vst [vmem:[%s1860_s9 + $0xa0] sm:$0xff] %v1026_v55  ;;  %v1029_v14 = vadd.f32 %v1721_v24, %v1028_v11 }
 0x2c8   :  { %1095 = vst [vmem:[%s1860_s9 + $0xb8] sm:$0xff] %v1037_v7 }
 0x2c9   :  { %1093 = vst [vmem:[%s1860_s9 + $0xa8] sm:$0xff] %v1029_v14 }
 0x2cb   :  { %v1337_v34 = vpop.f32.mrb[40].mxu0 }
 0x2cc   :  { %v1050_v48 = vadd.f32 %v1337_v34, %v1721_v24  ;;  %v1041_v51 = vpop.f32.mrb[41].mxu0 }
 0x2cd   :  { %v1042_v52 = vadd.f32 %v1721_v24, %v1041_v51  ;;  %v1338_v53 = vpop.f32.mrb[42].mxu0 }
 0x2ce   :  { %1098 = vst [vmem:[%s1860_s9 + $0xd0] sm:$0xff] %v1050_v48  ;;  %v1053_v54 = vadd.f32 %v1338_v53, %v1721_v24  ;;  %v1044_v57 = vpop.f32.mrb[43].mxu0 }
 0x2cf   :  { %1096 = vst [vmem:[%s1860_s9 + $0xc0] sm:$0xff] %v1042_v52  ;;  %v1045_v58 = vadd.f32 %v1721_v24, %v1044_v57 }
 0x2d0   :  { %1099 = vst [vmem:[%s1860_s9 + $0xd8] sm:$0xff] %v1053_v54 }
 0x2d1   :  { %1097 = vst [vmem:[%s1860_s9 + $0xc8] sm:$0xff] %v1045_v58 }
 0x2d3   :  { %v1341_v59 = vpop.f32.mrb[44].mxu0 }
 0x2d4   :  { %v1066_v60 = vadd.f32 %v1341_v59, %v1721_v24  ;;  %v1057_v61 = vpop.f32.mrb[45].mxu0 }
 0x2d5   :  { %v1058_v62 = vadd.f32 %v1721_v24, %v1057_v61  ;;  %v1342_v63 = vpop.f32.mrb[46].mxu0 }
 0x2d6   :  { %1102 = vst [vmem:[%s1860_s9 + $0xf0] sm:$0xff] %v1066_v60  ;;  %v1069_v0 = vadd.f32 %v1342_v63, %v1721_v24  ;;  %v1060_v1 = vpop.f32.mrb[47].mxu0 }
 0x2d7   :  { %1100 = vst [vmem:[%s1860_s9 + $0xe0] sm:$0xff] %v1058_v62  ;;  %v1061_v2 = vadd.f32 %v1721_v24, %v1060_v1 }
 0x2d8   :  { %1103 = vst [vmem:[%s1860_s9 + $0xf8] sm:$0xff] %v1069_v0 }
 0x2d9   :  { %1101 = vst [vmem:[%s1860_s9 + $0xe8] sm:$0xff] %v1061_v2 }

</bundles_post_ra>
